<compile_context>
chip_gen: v5e
topology: v5e:2x2
jax: 0.10.0
libtpu: 0.0.40
codegen_flags: <defaults>
</compile_context>

<pallas_src>
import functools

import jax
import jax.numpy as jnp
from jax.experimental import pallas as pl
from jax.experimental.pallas import tpu as pltpu

_LANE = 128
_MIB = 1024 * 1024


def _round_up(x, m):
    return (x + m - 1) // m * m


# -------------------- kernel bodies --------------------

def _contract(w_mat, x, use_mxu):
    """(Cout, Cin) x (Cin, T) -> (Cout, T) contraction with f32 accumulation.

    use_mxu=False unrolls an outer-product multiply-accumulate on the VPU;
    for tiny channel counts (<= 8) a 4x4 operand wastes the 128/256-wide MXU
    and serializes on its result FIFO (v5e/v6e), so the VPU path wins there.
    """
    if use_mxu:
        return jnp.dot(w_mat, x, preferred_element_type=jnp.float32)
    wf = w_mat.astype(jnp.float32)
    xf = x.astype(jnp.float32)
    cin = wf.shape[1]
    acc = wf[:, 0:1] * xf[0:1, :]
    for c in range(1, cin):
        acc = acc + wf[:, c:c + 1] * xf[c:c + 1, :]
    return acc


def _relu_kernel(w_ref, rot_w_ref, rot_b_ref, o_ref, *, use_mxu):
    # relu(rot(w)):  (Cout, Cin) @ (Cin, T) + (Cout, 1) -> (Cout, T)
    y = _contract(rot_w_ref[...], w_ref[...], use_mxu)
    y = y + rot_b_ref[...]
    o_ref[...] = jnp.maximum(y, 0.0).astype(o_ref.dtype)


def _residual_kernel(w_ref, wr_ref, rot_w_ref, rotr_w_ref, bias_ref, o_ref, *,
                     use_mxu):
    # rot(w) + rot_r(wr), with the two conv biases pre-folded into `bias`.
    y = _contract(rot_w_ref[...], w_ref[...], use_mxu)
    y = y + _contract(rotr_w_ref[...], wr_ref[...], use_mxu)
    y = y + bias_ref[...]
    o_ref[...] = y.astype(o_ref.dtype)


# -------------------- tiling / VMEM budgeting --------------------

def _vmem_budget_bytes():
    """Budget for one grid step's pipelined activation/output buffers.

    Conservative across generations: ~1/4 of physical VMEM, capped at 32 MiB
    (v5e/v6e have 128 MiB per core; v7x only 64 MiB per TensorCore).
    """
    try:
        cap = pltpu.get_tpu_info().vmem_capacity_bytes
        return int(min(32 * _MIB, max(16 * _MIB, cap // 4)))
    except Exception:
        return 16 * _MIB


def _choose_tile(hw_pad, batch, act_budget_bytes, per_lane_bytes, min_steps):
    """Largest lane tile (multiple of 128 that divides hw_pad) that (a) fits
    the double-buffered VMEM budget and (b) leaves >= min_steps grid steps so
    v7x's two TensorCores both get work."""
    cap = max(_LANE, (act_budget_bytes // per_lane_bytes) // _LANE * _LANE)
    divisors = [d for d in range(_LANE, hw_pad + 1, _LANE) if hw_pad % d == 0]
    fitting = [d for d in divisors if d <= cap] or [_LANE]
    good = [d for d in fitting if batch * (hw_pad // d) >= min_steps]
    return max(good) if good else max(fitting)


# -------------------- plain-XLA path (reference + small-problem bypass) ------

def _xla_forward(w, wr, params):
    rot_w = params["rot_w"][:, :, 0, 0]
    y = jnp.einsum("bchw,oc->bohw", w, rot_w,
                   precision=jax.lax.Precision.HIGHEST)
    y = y + params["rot_b"][None, :, None, None]
    if wr is None:
        return jnp.maximum(y, 0.0)
    rotr_w = params["rot_r_w"][:, :, 0, 0]
    yr = jnp.einsum("bchw,oc->bohw", wr, rotr_w,
                    precision=jax.lax.Precision.HIGHEST)
    yr = yr + params["rot_r_b"][None, :, None, None]
    return y + yr


# -------------------- wrapper --------------------

def conv_sep_kan_weight_cell(w, wr, params, *, compute_dtype=None,
                             force_pallas=False,
                             small_bytes_threshold=1 * _MIB,
                             min_grid_steps=4):
    """Pallas implementation of ConvSepKanWeightCell.forward.

    w:  (B, Cin, H, W)
    wr: (B, Cres, H, W) or None
    params: rot_w (Cin, Cin, 1, 1), rot_b (Cin,),
            and (if wr is not None) rot_r_w (Cin, Cres, 1, 1), rot_r_b (Cin,)
    compute_dtype: optional storage dtype for activations/weights (e.g.
        jnp.bfloat16) — accumulation and bias add stay f32.
    returns: (B, Cin, H, W)
    """
    B, Cin, H, W = w.shape
    HW = H * W

    rot_w = params["rot_w"][:, :, 0, 0]              # (Cout, Cin), no transpose
    Cout = rot_w.shape[0]
    has_res = wr is not None
    Cres = wr.shape[1] if has_res else 0

    itemsize = jnp.dtype(compute_dtype if compute_dtype is not None
                         else w.dtype).itemsize

    # ---- small-problem bypass: the pallas_call fixed cost dominates tiny
    # shapes; a fused 1x1-conv einsum is strictly faster there.
    traffic = itemsize * (B * HW * (Cin + Cres + Cout)
                          + Cout * (Cin + Cres + 1))
    if not force_pallas and traffic < small_bytes_threshold:
        return _xla_forward(w, wr, params)

    out_dtype = (jnp.dtype(compute_dtype) if compute_dtype is not None
                 else w.dtype)

    # ---- optional bf16 storage (HBM-bandwidth-bound op).
    if compute_dtype is not None:
        w = w.astype(compute_dtype)
        rot_w = rot_w.astype(compute_dtype)
        if has_res:
            wr = wr.astype(compute_dtype)

    # ---- pad HW to a multiple of 128: lane-dense tiles, unmasked stores.
    hw_pad = _round_up(HW, _LANE)

    # ---- VMEM-budget-aware HW tile.
    per_lane = 2 * itemsize * (Cin + Cres + Cout)          # dbl-buffered act+out
    wbytes = 2 * itemsize * Cout * (Cin + Cres + 1)        # weight blocks (cons.)
    budget = _vmem_budget_bytes()
    act_budget = max(2 * _LANE * per_lane, budget - wbytes)
    tile = _choose_tile(hw_pad, B, act_budget, per_lane, min_grid_steps)

    footprint = per_lane * tile + wbytes + 2 * _MIB        # + internal scratch
    vmem_limit = int(min(48 * _MIB, max(footprint + 8 * _MIB, 24 * _MIB)))

    grid = (B, hw_pad // tile)
    use_mxu = max(Cin, Cres, Cout) > 8

    # NCHW -> (B, C, HW): free reshape; pad lanes if needed.
    w3 = w.reshape(B, Cin, HW)
    if hw_pad != HW:
        w3 = jnp.pad(w3, ((0, 0), (0, 0), (0, hw_pad - HW)))

    def act_spec(C):
        return pl.BlockSpec((pl.Squeezed(), C, tile), lambda b, t: (b, 0, t))

    def wgt_spec(shape):
        return pl.BlockSpec(shape, lambda b, t: (0,) * len(shape))

    out_spec = pl.BlockSpec((pl.Squeezed(), Cout, tile), lambda b, t: (b, 0, t))

    compiler_params = pltpu.CompilerParams(
        dimension_semantics=("parallel", "parallel"),
        vmem_limit_bytes=vmem_limit)

    if not has_res:
        rot_b = params["rot_b"].astype(jnp.float32).reshape(Cout, 1)
        cost = pl.CostEstimate(
            flops=2 * B * hw_pad * Cin * Cout,
            transcendentals=0,
            bytes_accessed=itemsize * B * hw_pad * (Cin + Cout)
                           + 4 * Cout * (Cin + 1))
        out3 = pl.pallas_call(
            functools.partial(_relu_kernel, use_mxu=use_mxu),
            out_shape=jax.ShapeDtypeStruct((B, Cout, hw_pad), out_dtype),
            grid_spec=pltpu.PrefetchScalarGridSpec(
                num_scalar_prefetch=0,
                grid=grid,
                in_specs=[act_spec(Cin),
                          wgt_spec((Cout, Cin)),
                          wgt_spec((Cout, 1))],
                out_specs=out_spec),
            compiler_params=compiler_params,
            cost_estimate=cost,
        )(w3, rot_w, rot_b)
    else:
        assert wr.shape[0] == B and wr.shape[2] == H and wr.shape[3] == W
        wr3 = wr.reshape(B, Cres, HW)
        if hw_pad != HW:
            wr3 = jnp.pad(wr3, ((0, 0), (0, 0), (0, hw_pad - HW)))
        rotr_w = params["rot_r_w"][:, :, 0, 0]
        if compute_dtype is not None:
            rotr_w = rotr_w.astype(compute_dtype)
        # Fold the two conv biases into one vector (one add in-kernel).
        bias = (params["rot_b"] + params["rot_r_b"]).astype(jnp.float32)
        bias = bias.reshape(Cout, 1)
        cost = pl.CostEstimate(
            flops=2 * B * hw_pad * (Cin + Cres) * Cout,
            transcendentals=0,
            bytes_accessed=itemsize * B * hw_pad * (Cin + Cres + Cout)
                           + 4 * Cout * (Cin + Cres + 1))
        out3 = pl.pallas_call(
            functools.partial(_residual_kernel, use_mxu=use_mxu),
            out_shape=jax.ShapeDtypeStruct((B, Cout, hw_pad), out_dtype),
            grid_spec=pltpu.PrefetchScalarGridSpec(
                num_scalar_prefetch=0,
                grid=grid,
                in_specs=[act_spec(Cin),
                          act_spec(Cres),
                          wgt_spec((Cout, Cin)),
                          wgt_spec((Cout, Cres)),
                          wgt_spec((Cout, 1))],
                out_specs=out_spec),
            compiler_params=compiler_params,
            cost_estimate=cost,
        )(w3, wr3, rot_w, rotr_w, bias)

    if hw_pad != HW:
        out3 = out3[:, :, :HW]
    return out3.reshape(B, Cout, H, W)


# -------------------- test helpers --------------------

def _make_case(key, B, Cin, Cres, H, W):
    k = jax.random.split(key, 6)
    params = {
        "rot_w":   jax.random.normal(k[0], (Cin, Cin, 1, 1), jnp.float32) * 0.5,
        "rot_b":   jax.random.normal(k[1], (Cin,),            jnp.float32) * 0.1,
        "rot_r_w": jax.random.normal(k[2], (Cin, Cres, 1, 1), jnp.float32) * 0.5,
        "rot_r_b": jax.random.normal(k[3], (Cin,),            jnp.float32) * 0.1,
    }
    w = jax.random.normal(k[4], (B, Cin, H, W), jnp.float32)
    wr = jax.random.normal(k[5], (B, Cres, H, W), jnp.float32)
    return w, wr, params


# -------------------- main --------------------

if __name__ == "__main__":
    root = jax.random.PRNGKey(0)
    k1, k2, k3 = jax.random.split(root, 3)

    # ---- Case 1: canonical small shape (B=2, Cin=4, Cres=3, 16x16). VPU path.
    w, wr, params = _make_case(k1, 2, 4, 3, 16, 16)

    out_res = jax.block_until_ready(
        conv_sep_kan_weight_cell(w, wr, params, force_pallas=True))
    assert out_res.shape == (2, 4, 16, 16)
    assert jnp.allclose(out_res, _xla_forward(w, wr, params),
                        atol=1e-4, rtol=1e-4)

    out_relu = jax.block_until_ready(
        conv_sep_kan_weight_cell(w, None, params, force_pallas=True))
    assert out_relu.shape == (2, 4, 16, 16)
    assert jnp.allclose(out_relu, _xla_forward(w, None, params),
                        atol=1e-4, rtol=1e-4)

    # bf16 storage / f32 accumulation option (halves HBM traffic).
    out_bf16 = jax.block_until_ready(
        conv_sep_kan_weight_cell(w, wr, params, force_pallas=True,
                                 compute_dtype=jnp.bfloat16))
    assert jnp.allclose(out_bf16.astype(jnp.float32),
                        _xla_forward(w, wr, params), atol=1e-1, rtol=1e-1)

    # Small-problem bypass (default path for this tiny shape).
    out_bypass = jax.block_until_ready(conv_sep_kan_weight_cell(w, wr, params))
    assert jnp.allclose(out_bypass, _xla_forward(w, wr, params),
                        atol=1e-5, rtol=1e-5)

    # ---- Case 2: HW (=100) not a multiple of 128 -> wrapper pads lanes.
    w2, wr2, params2 = _make_case(k2, 2, 4, 3, 10, 10)
    out2 = jax.block_until_ready(
        conv_sep_kan_weight_cell(w2, wr2, params2, force_pallas=True))
    assert out2.shape == (2, 4, 10, 10)
    assert jnp.allclose(out2, _xla_forward(w2, wr2, params2),
                        atol=1e-4, rtol=1e-4)

    # ---- Case 3: larger channels (MXU path) and multi-tile HW grid.
    w3, wr3, params3 = _make_case(k3, 2, 16, 16, 16, 32)
    out3 = jax.block_until_ready(
        conv_sep_kan_weight_cell(w3, wr3, params3, force_pallas=True))
    assert out3.shape == (2, 16, 16, 32)
    assert jnp.allclose(out3, _xla_forward(w3, wr3, params3),
                        atol=5e-2, rtol=5e-2)

    print("KERNEL_OK")
</pallas_src>

<mosaic_0001>
module attributes {stable_mosaic.version = 11 : i64} {
  func.func @_residual_kernel(%arg0: i32, %arg1: i32, %arg2: memref<1x4x128xf32, #tpu.memory_space<vmem>>, %arg3: memref<1x3x128xf32, #tpu.memory_space<vmem>>, %arg4: memref<4x4xf32, #tpu.memory_space<vmem>>, %arg5: memref<4x3xf32, #tpu.memory_space<vmem>>, %arg6: memref<4x1xf32, #tpu.memory_space<vmem>>, %arg7: memref<1x4x128xf32, #tpu.memory_space<vmem>>) attributes {dimension_semantics = [#tpu.dimension_semantics<parallel>, #tpu.dimension_semantics<parallel>], iteration_bounds = array<i64: 2, 2>, scalar_prefetch = 0 : i64, scratch_operands = 0 : i64, tpu.core_type = #tpu.core_type<tc>, window_params = [{transform_indices = @transform_0, window_bounds = array<i64: 1, 4, 128>}, {transform_indices = @transform_1, window_bounds = array<i64: 1, 3, 128>}, {pipeline_mode = #tpu.pipeline_mode<synchronous>, transform_indices = @transform_2, window_bounds = array<i64: 4, 4>}, {pipeline_mode = #tpu.pipeline_mode<synchronous>, transform_indices = @transform_3, window_bounds = array<i64: 4, 3>}, {pipeline_mode = #tpu.pipeline_mode<synchronous>, transform_indices = @transform_4, window_bounds = array<i64: 4, 1>}, {transform_indices = @transform_5, window_bounds = array<i64: 1, 4, 128>}]} {
    %c0 = arith.constant 0 : index
    %c0_0 = arith.constant 0 : index
    %0 = vector.load %arg4[%c0, %c0_0] : memref<4x4xf32, #tpu.memory_space<vmem>>, vector<4x4xf32>
    %c0_1 = arith.constant 0 : index
    %c0_2 = arith.constant 0 : index
    %c0_3 = arith.constant 0 : index
    %1 = vector.load %arg2[%c0_1, %c0_2, %c0_3] : memref<1x4x128xf32, #tpu.memory_space<vmem>>, vector<1x4x128xf32>
    %2 = vector.shape_cast %1 : vector<1x4x128xf32> to vector<4x128xf32>
    %3 = vector.extract_strided_slice %0 {offsets = [0, 0], sizes = [4, 1], strides = [1, 1]} : vector<4x4xf32> to vector<4x1xf32>
    %4 = vector.extract_strided_slice %2 {offsets = [0, 0], sizes = [1, 128], strides = [1, 1]} : vector<4x128xf32> to vector<1x128xf32>
    %5 = vector.broadcast %3 : vector<4x1xf32> to vector<4x128xf32>
    %6 = vector.broadcast %4 : vector<1x128xf32> to vector<4x128xf32>
    %7 = arith.mulf %5, %6 : vector<4x128xf32>
    %8 = vector.extract_strided_slice %0 {offsets = [0, 1], sizes = [4, 1], strides = [1, 1]} : vector<4x4xf32> to vector<4x1xf32>
    %9 = vector.extract_strided_slice %2 {offsets = [1, 0], sizes = [1, 128], strides = [1, 1]} : vector<4x128xf32> to vector<1x128xf32>
    %10 = vector.broadcast %8 : vector<4x1xf32> to vector<4x128xf32>
    %11 = vector.broadcast %9 : vector<1x128xf32> to vector<4x128xf32>
    %12 = arith.mulf %10, %11 : vector<4x128xf32>
    %13 = arith.addf %7, %12 : vector<4x128xf32>
    %14 = vector.extract_strided_slice %0 {offsets = [0, 2], sizes = [4, 1], strides = [1, 1]} : vector<4x4xf32> to vector<4x1xf32>
    %15 = vector.extract_strided_slice %2 {offsets = [2, 0], sizes = [1, 128], strides = [1, 1]} : vector<4x128xf32> to vector<1x128xf32>
    %16 = vector.broadcast %14 : vector<4x1xf32> to vector<4x128xf32>
    %17 = vector.broadcast %15 : vector<1x128xf32> to vector<4x128xf32>
    %18 = arith.mulf %16, %17 : vector<4x128xf32>
    %19 = arith.addf %13, %18 : vector<4x128xf32>
    %20 = vector.extract_strided_slice %0 {offsets = [0, 3], sizes = [4, 1], strides = [1, 1]} : vector<4x4xf32> to vector<4x1xf32>
    %21 = vector.extract_strided_slice %2 {offsets = [3, 0], sizes = [1, 128], strides = [1, 1]} : vector<4x128xf32> to vector<1x128xf32>
    %22 = vector.broadcast %20 : vector<4x1xf32> to vector<4x128xf32>
    %23 = vector.broadcast %21 : vector<1x128xf32> to vector<4x128xf32>
    %24 = arith.mulf %22, %23 : vector<4x128xf32>
    %25 = arith.addf %19, %24 : vector<4x128xf32>
    %c0_4 = arith.constant 0 : index
    %c0_5 = arith.constant 0 : index
    %26 = vector.load %arg5[%c0_4, %c0_5] : memref<4x3xf32, #tpu.memory_space<vmem>>, vector<4x3xf32>
    %c0_6 = arith.constant 0 : index
    %c0_7 = arith.constant 0 : index
    %c0_8 = arith.constant 0 : index
    %27 = vector.load %arg3[%c0_6, %c0_7, %c0_8] : memref<1x3x128xf32, #tpu.memory_space<vmem>>, vector<1x3x128xf32>
    %28 = vector.shape_cast %27 : vector<1x3x128xf32> to vector<3x128xf32>
    %29 = vector.extract_strided_slice %26 {offsets = [0, 0], sizes = [4, 1], strides = [1, 1]} : vector<4x3xf32> to vector<4x1xf32>
    %30 = vector.extract_strided_slice %28 {offsets = [0, 0], sizes = [1, 128], strides = [1, 1]} : vector<3x128xf32> to vector<1x128xf32>
    %31 = vector.broadcast %29 : vector<4x1xf32> to vector<4x128xf32>
    %32 = vector.broadcast %30 : vector<1x128xf32> to vector<4x128xf32>
    %33 = arith.mulf %31, %32 : vector<4x128xf32>
    %34 = vector.extract_strided_slice %26 {offsets = [0, 1], sizes = [4, 1], strides = [1, 1]} : vector<4x3xf32> to vector<4x1xf32>
    %35 = vector.extract_strided_slice %28 {offsets = [1, 0], sizes = [1, 128], strides = [1, 1]} : vector<3x128xf32> to vector<1x128xf32>
    %36 = vector.broadcast %34 : vector<4x1xf32> to vector<4x128xf32>
    %37 = vector.broadcast %35 : vector<1x128xf32> to vector<4x128xf32>
    %38 = arith.mulf %36, %37 : vector<4x128xf32>
    %39 = arith.addf %33, %38 : vector<4x128xf32>
    %40 = vector.extract_strided_slice %26 {offsets = [0, 2], sizes = [4, 1], strides = [1, 1]} : vector<4x3xf32> to vector<4x1xf32>
    %41 = vector.extract_strided_slice %28 {offsets = [2, 0], sizes = [1, 128], strides = [1, 1]} : vector<3x128xf32> to vector<1x128xf32>
    %42 = vector.broadcast %40 : vector<4x1xf32> to vector<4x128xf32>
    %43 = vector.broadcast %41 : vector<1x128xf32> to vector<4x128xf32>
    %44 = arith.mulf %42, %43 : vector<4x128xf32>
    %45 = arith.addf %39, %44 : vector<4x128xf32>
    %46 = arith.addf %25, %45 : vector<4x128xf32>
    %c0_9 = arith.constant 0 : index
    %c0_10 = arith.constant 0 : index
    %47 = vector.load %arg6[%c0_9, %c0_10] : memref<4x1xf32, #tpu.memory_space<vmem>>, vector<4x1xf32>
    %48 = vector.broadcast %47 : vector<4x1xf32> to vector<4x128xf32>
    %49 = arith.addf %46, %48 : vector<4x128xf32>
    %c0_11 = arith.constant 0 : index
    %c0_12 = arith.constant 0 : index
    %c0_13 = arith.constant 0 : index
    %50 = vector.load %arg7[%c0_11, %c0_12, %c0_13] : memref<1x4x128xf32, #tpu.memory_space<vmem>>, vector<1x4x128xf32>
    %51 = vector.shape_cast %50 : vector<1x4x128xf32> to vector<4x128xf32>
    %52 = vector.shape_cast %49 : vector<4x128xf32> to vector<1x4x128xf32>
    tpu.vector_store %arg7[%c0_11, %c0_12, %c0_13], %52 {strides = array<i32>} : memref<1x4x128xf32, #tpu.memory_space<vmem>>, vector<1x4x128xf32>,
    return
  }
  func.func @transform_0(%arg0: i32, %arg1: i32) -> (i32, i32, i32) {
    %c0_i32 = arith.constant 0 : i32
    %c0_i32_0 = arith.constant 0 : i32
    return %arg0, %c0_i32, %arg1 : i32, i32, i32
  }
  func.func @transform_1(%arg0: i32, %arg1: i32) -> (i32, i32, i32) {
    %c0_i32 = arith.constant 0 : i32
    %c0_i32_0 = arith.constant 0 : i32
    return %arg0, %c0_i32, %arg1 : i32, i32, i32
  }
  func.func @transform_2(%arg0: i32, %arg1: i32) -> (i32, i32) {
    %c0_i32 = arith.constant 0 : i32
    %c0_i32_0 = arith.constant 0 : i32
    %c0_i32_1 = arith.constant 0 : i32
    return %c0_i32, %c0_i32_0 : i32, i32
  }
  func.func @transform_3(%arg0: i32, %arg1: i32) -> (i32, i32) {
    %c0_i32 = arith.constant 0 : i32
    %c0_i32_0 = arith.constant 0 : i32
    %c0_i32_1 = arith.constant 0 : i32
    return %c0_i32, %c0_i32_0 : i32, i32
  }
  func.func @transform_4(%arg0: i32, %arg1: i32) -> (i32, i32) {
    %c0_i32 = arith.constant 0 : i32
    %c0_i32_0 = arith.constant 0 : i32
    %c0_i32_1 = arith.constant 0 : i32
    return %c0_i32, %c0_i32_0 : i32, i32
  }
  func.func @transform_5(%arg0: i32, %arg1: i32) -> (i32, i32, i32) {
    %c0_i32 = arith.constant 0 : i32
    %c0_i32_0 = arith.constant 0 : i32
    return %arg0, %c0_i32, %arg1 : i32, i32, i32
  }
}

</mosaic_0001>

<bundles_post_ra>
// kernel: tpu_custom_call.1
= control target key start
LH: loop header
LB: loop body
LE: loop exit
PB: predicated region body
PF: predicated region fallthrough
CT: control target
= control target key end

     0   :  { %10 = vsyncpa [#allocation3], 0  ;;  %s818_s0 = inlined_call_operand.vmem [shape: f32[2,4,256], index: 0, kind: input, shape index: {}]   ;;  %s819_s1 = inlined_call_operand.vmem [shape: f32[2,3,256], index: 1, kind: input, shape index: {}]   ;;  %s820_s2 = inlined_call_operand.vmem [shape: f32[4,4], index: 2, kind: input, shape index: {}]   ;;  %s821_s3 = inlined_call_operand.vmem [shape: f32[4,3], index: 3, kind: input, shape index: {}]   ;;  %s822_s4 = inlined_call_operand.vmem [shape: f32[4,1], index: 4, kind: input, shape index: {}]   ;;  %s823_s5 = inlined_call_operand.hbm [shape: f32[2,4,256], index: 5, kind: output, shape index: {}]  }
   0x1   :  { %12 = vsyncpa [#allocation3 + $0x1], 0  ;;  %s684_s18 = smov 0   ;;  %s686_s19 = smov 0  }
   0x2   :  { %s688_s20 = smov 0   ;;  %s690_s21 = smov 0  }
   0x3   :  { %s692_s22 = smov 0   ;;  %s694_s23 = smov 0  }
   0x4   :  { %s696_s24 = smov 0   ;;  %s698_s25 = smov 0  }
   0x5 LB: > { %s455_s26 = sadd.s32 4294967295, %s648_s25   ;;  %s456_s27 = sadd.s32 4294967294, %s648_s25   ;;  %s648_s25 = sphi %s698_s25, %s18_s25   ;;  %s644_s24 = sphi %s696_s24, %s832_s24   ;;  %s640_s23 = sphi %s694_s23, %s831_s23   ;;  %s636_s22 = sphi %s692_s22, %s830_s22   ;;  %s632_s21 = sphi %s690_s21, %s829_s21   ;;  %s628_s20 = sphi %s688_s20, %s828_s20   ;;  %s624_s19 = sphi %s686_s19, %s827_s19   ;;  %s620_s18 = sphi %s684_s18, %s826_s18  }
   0x6   : > { %s27_s28 = sadd.s32 1, %s640_s23  ;;  %s30_s29 = sadd.s32 1, %s644_s24 }
   0x7   : > { %p28_p0 = scmp.ge.s32.totalorder %s27_s28, 2  ;;  %p168_p1 = scmp.ne.s32.totalorder %s628_s20, %s624_s19 }
   0x8   : > { %p169_p2 = scmp.eq.s32.totalorder %s455_s26, 3  ;;  %p174_p5 = scmp.ne.s32.totalorder %s624_s19, %s620_s18 }
   0x9   : > { %s834_s28 = smov (%p28_p0, %s27_s28), 0  ;;  %s836_s29 = smov (!%p28_p0, %s30_s29), %s644_s24 }
   0xa   : > { %s154_s30 = ssub.s32 %s640_s23, %s834_s28  ;;  %p735_p3 = por %p169_p2, %p168_p1 }
   0xb   : > { %p32_p4 = scmp.ge.s32.totalorder %s836_s29, 2  ;;  %p175_p6 = scmp.eq.s32.totalorder %s456_s27, 3 }
   0xc   : > { %p459_p7 = scmp.ge.s32.totalorder %s648_s25, 1  ;;  %p224_p9 = scmp.lt.s32.totalorder %s648_s25, 5 }
   0xd   : > { %s838_s29 = smov (%p32_p4, %s836_s29), 0  ;;  %p744_p8 = por %p175_p6, %p174_p5 }
   0xe   : > { %s153_s8 = ssub.s32 %s644_s24, %s838_s29  ;;  %s158_s9 = sadd.s32 1, %s628_s20 }
   0xf   : > { %s155_s10 = sor.u32 %s154_s30, %s153_s8  ;;  %p225_p10 = pnand %p459_p7, %p224_p9 }
  0x10   : > { %p156_p11 = scmp.eq.s32.totalorder %s155_s10, 0  ;;  %p263_p12 = scmp.lt.s32.totalorder (!%p225_p10), %s636_s22, 1 }
  0x11   : > { %228 = sbr.rel (%p225_p10) target bundleno = 168 (0xa8), region = 40  ;;  %p265_p13 = scmp.lt.s32.totalorder (!%p225_p10), %s632_s21, 1 }
  0x12   : > { %s753_s11 = scalar_select %p156_p11, %s628_s20, %s158_s9  }
  0x13   : > { %s466_s17 = sshll.u32 (!%p225_p10), %s636_s22, 1 }
  0x16   : > { %v279_v0 = vld [vmem:[%s820_s2] sm:$0xf]  ;;  %v650_v1 = vmov 2   ;;  %v651_v2 = vmov 0   ;;  %v652_v4 = vmov 1   ;;  %v653_v5 = vmov 3  }
  0x17   : > { %547 = vset.pattern.permute.xlu1 %v650_v1  ;;  %545 = vset.pattern.permute.xlu0 %v651_v2  ;;  %v309_v3 = vld [vmem:[%s821_s3] sm:$0xf]  ;;  %s264_s26 = scalar_select %p263_p12, %s636_s22, 1 }
  0x18   : > { %296 = vperm.xlu1 %547, %v279_v0   ;;  %283 = vperm.xlu0 %545, %v279_v0   ;;  %v333_v6 = vld [vmem:[%s822_s4] sm:$0xf]  ;;  %s266_s27 = scalar_select %p265_p13, %s632_s21, 1 }
  0x19   : > { %549 = vset.pattern.permute.xlu2 %v652_v4  ;;  %s461_s30 = sshll.u32 %s264_s26, 1  ;;  %s260_s26 = sand.u32 1, %s624_s19  }
  0x1a   : > { %319 = vperm.xlu2 %549, %v309_v3   ;;  %s268_s8 = sadd.s32 %s461_s30, %s266_s27  ;;  %s352_s27 = sadd.s32 %s632_s21, %s466_s17 }
  0x1b   : > { %s462_s9 = sshll.u32 %s268_s8, 2  ;;  %s460_s30 = sshll.u32 %s260_s26, 2 }
  0x1c   : > { %s270_s13 = scalar_lea.vmem %s818_s0, %s462_s9  ;;  %s278_s16 = scalar_lea.vmem %s819_s1, %s462_s9 }
  0x1d   : > { %v280_v10 = vld [vmem:[%s270_s13] sm:$0xf]  ;;  %s467_s8 = sshll.u32 %s352_s27, 2  ;;  %s262_s21 = scalar_lea.vmem [#allocation2], %s460_s30 }
  0x1e   : > { %v292_v11 = vperm.slane %v280_v10, 1  ;;  %v286_v12 = vperm.slane %v280_v10, 0  ;;  %v310_v15 = vld [vmem:[%s278_s16] sm:$0x7]  ;;  %v299_v17 = vperm.slane %v280_v10, 2  ;;  %v306_v22 = vperm.slane %v280_v10, 3  ;;  %s354_s10 = scalar_lea.hbm %s823_s5, %s467_s8 }
  0x1f   : > { %v316_v19 = vperm.slane %v310_v15, 0  ;;  %v322_v20 = vperm.slane %v310_v15, 1  ;;  %v329_v26 = vperm.slane %v310_v15, 2  ;;  %s356_s12 = sshll.u32 %s262_s21, 4  ;;  %s358_s13 = sshll.u32 %s354_s10, 4  ;;  %s357_s12 = int_to_ptr.vmem [resolvable:$true] %s356_s12  ;;  %s359_s13 = int_to_ptr.hbm [resolvable:$true] %s358_s13 }
  0x20   : > { %548 = vset.pattern.permute.xlu1 %v651_v2  ;;  %546 = vset.pattern.permute.xlu0 %v652_v4  ;;  %s342_s14 = scalar_lea.sflag [#allocation3], %s260_s26  ;;  %s568_s15 = sshra.s32 %s359_s13, 4  ;;  %s569_s15 = int_to_ptr.hbm [resolvable:$true] %s568_s15 }
  0x21   : > { %313 = vperm.xlu1 %548, %v309_v3   ;;  %289 = vperm.xlu0 %546, %v279_v0   ;;  %s570_s16 = scalar_lea.hbm %s569_s15, 4  ;;  %s574_s8 = scalar_lea.hbm %s823_s5, 16 }
  0x22   : > { %550 = vset.pattern.permute.xlu2 %v653_v5  ;;  %p571_p0 = scmp.ne.s32.totalorder %s569_s15, %s570_s16  ;;  %p575_p4 = scmp.lt.s32.totalorder %s569_s15, %s823_s5 }
  0x23   : > { %303 = vperm.xlu2 %550, %v279_v0   ;;  %p576_p5 = scmp.lt.s32.totalorder %s574_s8, %s570_s16 }
  0x24   : > { %p572_p1 = pnand %p571_p0, %p735_p3 }
  0x25   : > { %p577_p6 = por %p576_p5, %p575_p4 }
  0x26   : > { %p573_p2 = pneg %p572_p1 }
  0x28   : > { %p578_p7 = pnand %p577_p6, %p573_p2 }
  0x29   : > { %551 = vset.pattern.permute.xlu1 %v650_v1  ;;  %553 = vset.pattern.permute.xlu0 %v651_v2 }
  0x2a   : > { %326 = vperm.xlu1 %551, %v309_v3  }
  0x2b   : > { %552 = vset.pattern.permute.xlu2 %v651_v2 }
  0x2c   : > { %336 = vperm.xlu2 %552, %v333_v6  }
  0x74   : > { %v320_v9 = vpop.permute.xlu2 %319 }
  0x75   : > { %v323_v27 = vmul.f32 %v322_v20, %v320_v9 }
  0x7d   : > { %v304_v23 = vpop.permute.xlu2 %303 }
  0x7e   : > { %v307_v29 = vmul.f32 %v306_v22, %v304_v23 }
  0x86   : > { %v337_v35 = vpop.permute.xlu2 %336 }
  0x8a   : > { %v297_v7 = vpop.permute.xlu1 %296  ;;  %v284_v8 = vpop.permute.xlu0 %283 }
  0x8b   : > { %v287_v18 = vmul.f32 %v286_v12, %v284_v8  ;;  %v300_v24 = vmul.f32 %v299_v17, %v297_v7 }
  0x93   : > { %v314_v13 = vpop.permute.xlu1 %313  ;;  %v290_v14 = vpop.permute.xlu0 %289 }
  0x94   : > { %v293_v16 = vmul.f32 %v292_v11, %v290_v14  ;;  %v317_v25 = vmul.f32 %v316_v19, %v314_v13 }
  0x96   : > { %v294_v21 = vadd.f32 %v293_v16, %v287_v18  ;;  %v324_v31 = vadd.f32 %v323_v27, %v317_v25 }
  0x98   : > { %v301_v28 = vadd.f32 %v300_v24, %v294_v21 }
  0x9a   : > { %v308_v33 = vadd.f32 %v307_v29, %v301_v28 }
  0x9c   : > { %v327_v30 = vpop.permute.xlu1 %326 }
  0x9d   : > { %v330_v32 = vmul.f32 %v329_v26, %v327_v30 }
  0x9f   : > { %v331_v34 = vadd.f32 %v330_v32, %v324_v31 }
  0xa1   : > { %v332_v36 = vadd.f32 %v331_v34, %v308_v33 }
  0xa3   : > { %v339_v37 = vadd.f32 %v337_v35, %v332_v36 }
  0xa5   : > { %340 = vst [vmem:[%s262_s21] sm:$0xf] %v339_v37 }
  0xa6   : > { %581 = shalt.err (!%p578_p7)
}
  0xa7   : > { %470 = dma.vmem_to_hbm [thread:$0]  (%p735_p3), %s357_s12, 64, %s359_s13, %s342_s14  }
  0xa8 PF: > { %p476_p9 = scmp.ge.s32.totalorder %s648_s25, 2  ;;  %s370_s26 = sand.u32 1, %s620_s18  }
  0xa9   : > { %s371_s9 = scalar_lea.sflag [#allocation3], %s370_s26 }
  0xaa   : > { %p473_p10 = pnand %p476_p9, %p744_p8 }
  0xac   : > { %p474_p11 = pneg %p473_p10 }
  0xae   : > { %615 = dma.done.wait (%p474_p11), %s371_s9, 64  }
  0xaf   : > { %617 = vsyncadd (%p474_p11), %s371_s9, 4294967232  ;;  %s18_s25 = sadd.s32 1, %s648_s25   ;;  %s826_s18 = smov %s624_s19 }
  0xb0   : > { %p15_p12 = scmp.ge.s32.totalorder %s18_s25, 6   ;;  %s827_s19 = smov %s628_s20 }
  0xb1   : > { %s828_s20 = smov %s753_s11  ;;  %s829_s21 = smov %s640_s23 }
  0xb2   : > { %s830_s22 = smov %s644_s24  ;;  %s831_s23 = smov %s834_s28 }
  0xb3   : > { %s832_s24 = smov %s838_s29  ;;  %17 = sbr.rel (!%p15_p12) target bundleno = 5 (0x5), region = 78 }
  0xb8   :  { %377 = vsyncpa [#allocation3], 1 }
  0xb9   :  { %379 = vsyncpa [#allocation3 + $0x1], 1 }

</bundles_post_ra>
